<compile_context>
chip_gen: v5e
topology: v5e:2x2
jax: 0.10.0
libtpu: 0.0.40
codegen_flags: <defaults>
</compile_context>

<pallas_src>
import jax
import jax.numpy as jnp
import numpy as np
from jax.experimental import pallas as pl
from jax.experimental.pallas import tpu as pltpu

# ---------------- Config (small test shapes, consistent with the module) ------
B = 2            # batch
NUM_NODES = 16   # num_nodes
IN_DIM = 1       # in_dim
IN_LEN = 8       # in_len
OUT_LEN = 8      # out_len
LAYERS = 3       # encoder layers
NODE_DIM = 32
EMBED_DIM = 32
HIDDEN = EMBED_DIM + NODE_DIM      # if_node=True
DIN = IN_DIM * IN_LEN
M = B * NUM_NODES                  # real columns
M_PAD = 128                        # lane-dense padded width
assert M <= M_PAD


def _sigmoid(x):
    return 1.0 / (1.0 + jnp.exp(-x))


# ---------------- Fused kernel: MLP encoder + heads + SIR recurrence ----------
def pisid_kernel(x_ts_ref, sir_ref, h_init_ref, w_emb_ref, w_all_ref,
                 b_all_ref, out_ref):
    # --- embedding: channel-major 1x1 conv == one MXU matmul.  Node features
    #     and conv bias are pre-packed into h_init; W_emb is zero-padded to
    #     HIDDEN rows so the result adds straight onto h_init (no concat).
    h = h_init_ref[...] + jnp.dot(w_emb_ref[...], x_ts_ref[...],
                                  preferred_element_type=jnp.float32)   # [HIDDEN, M_PAD] f32

    # --- MLP encoder with residual links (dropout == identity at inference).
    #     bf16 operands on the MXU, f32 accumulation, f32 residual path.
    for l in range(LAYERS):                                   # static unroll (3)
        z = jnp.dot(w_all_ref[2 * l], h.astype(jnp.bfloat16),
                    preferred_element_type=jnp.float32) + b_all_ref[2 * l]
        z = jnp.maximum(z, 0.0)                               # ReLU
        z = jnp.dot(w_all_ref[2 * l + 1], z.astype(jnp.bfloat16),
                    preferred_element_type=jnp.float32) + b_all_ref[2 * l + 1]
        h = h + z

    # --- fused regression heads: rows 0 (param_b) / 1 (param_g) of the padded
    #     head slot; sigmoid via EUP exp + approx reciprocal.
    logits = jnp.dot(w_all_ref[2 * LAYERS], h.astype(jnp.bfloat16),
                     preferred_element_type=jnp.float32) + b_all_ref[2 * LAYERS]
    p = pl.reciprocal(1.0 + jnp.exp(-logits[0:2, :]), approx=True)
    beta = p[0:1, :]                                          # [1, M_PAD]
    g = p[1:2, :]                                             # [1, M_PAD]

    # --- SIR initialization from the input window (all f32 elementwise) -------
    i_ser = sir_ref[0:IN_LEN, :]                              # [L, M_PAD]
    Nv = sir_ref[IN_LEN:IN_LEN + 1, :]                        # [1, M_PAD] (pad lanes = 1)
    s0 = sir_ref[IN_LEN + 1:IN_LEN + 2, :]                    # [1, M_PAD]

    inv_n = pl.reciprocal(Nv, approx=True)                    # EUP, hoisted
    inv_g = 1.0 / g                                           # exact (g can be small)
    decay = jnp.exp(-g)                                       # hoisted exp(-g)
    binv = beta * inv_n                                       # hoisted beta / N

    i_hist = i_ser * inv_g
    iin_hist = jnp.maximum(i_hist[1:, :] - i_hist[:-1, :] + i_ser[:-1, :], 0.0)
    ages = jax.lax.broadcasted_iota(jnp.int32, (IN_LEN - 1, M_PAD), 0)
    ages = jnp.float32(IN_LEN - 1) - ages.astype(jnp.float32)          # L-1 .. 1
    i_t = jnp.sum(jnp.exp(-g * ages) * iin_hist, axis=0, keepdims=True)  # I_{T-1}

    s_t = s0 - i_t                    # S_{T-1} = N - I_{T-1} - (N - S0)
    iin = binv * s_t * i_t
    s_t = s_t - iin
    i_t = decay * (i_t + iin)         # O(1) history update -> I_T

    # --- forecast loop: each step writes one full-lane row of out_ref ---------
    for t in range(OUT_LEN):                                  # static unroll (8)
        iin = binv * s_t * i_t
        s_t = s_t - iin
        out_ref[t:t + 1, :] = g * i_t                         # Rin_t = param_g * I_T
        i_t = decay * (i_t + iin)


# ---------------- Parameter init (deterministic, synthetic) -------------------
def init_params(key):
    ks = jax.random.split(key, 11)

    def w(k, shape, scale=0.1):
        return scale * jax.random.normal(k, shape, dtype=jnp.float32)

    return dict(
        node_emb=w(ks[0], (NUM_NODES, NODE_DIM)),
        w_emb=w(ks[1], (EMBED_DIM, DIN)),             # conv-style [out, in]
        b_emb=w(ks[2], (EMBED_DIM, 1), 0.05),
        w1=w(ks[3], (LAYERS, HIDDEN, HIDDEN)),
        b1=w(ks[4], (LAYERS, HIDDEN, 1), 0.05),
        w2=w(ks[5], (LAYERS, HIDDEN, HIDDEN)),
        b2=w(ks[6], (LAYERS, HIDDEN, 1), 0.05),
        w_rb=w(ks[7], (1, HIDDEN)),
        b_rb=w(ks[8], (1, 1), 0.05),
        w_rg=w(ks[9], (1, HIDDEN)),
        b_rg=w(ks[10], (1, 1), 0.05),
    )


# ---------------- One-time parameter packing (outside the per-call jit) -------
def prepare_params(params, bsz):
    m = bsz * NUM_NODES
    assert m <= M_PAD

    # h_init: embedding bias in rows [0, EMBED_DIM), tiled node embedding in
    # rows [EMBED_DIM, HIDDEN); padded lanes get zeros in the node rows.
    h_init = jnp.zeros((HIDDEN, M_PAD), jnp.float32)
    h_init = h_init.at[0:EMBED_DIM, :].set(
        jnp.broadcast_to(params["b_emb"], (EMBED_DIM, M_PAD)))
    node_t = jnp.tile(params["node_emb"].T, (1, bsz))          # [NODE_DIM, m]
    h_init = h_init.at[EMBED_DIM:HIDDEN, 0:m].set(node_t)

    # Embedding weight zero-padded to HIDDEN output rows (bottom half zero so
    # the single embedding matmul leaves the node rows of h_init untouched).
    w_emb = jnp.zeros((HIDDEN, DIN), jnp.float32)
    w_emb = w_emb.at[0:EMBED_DIM, :].set(params["w_emb"])

    # Encoder + fused-head weights / biases packed into single stacks:
    #   slot 2l   = fc1 of layer l, slot 2l+1 = fc2 of layer l,
    #   slot 2L   = [w_rb ; w_rg] in its first two rows (rest zero).
    w_all = jnp.zeros((2 * LAYERS + 1, HIDDEN, HIDDEN), jnp.float32)
    b_all = jnp.zeros((2 * LAYERS + 1, HIDDEN, 1), jnp.float32)
    for l in range(LAYERS):
        w_all = w_all.at[2 * l].set(params["w1"][l])
        w_all = w_all.at[2 * l + 1].set(params["w2"][l])
        b_all = b_all.at[2 * l].set(params["b1"][l])
        b_all = b_all.at[2 * l + 1].set(params["b2"][l])
    w_all = w_all.at[2 * LAYERS, 0, :].set(params["w_rb"][0])
    w_all = w_all.at[2 * LAYERS, 1, :].set(params["w_rg"][0])
    b_all = b_all.at[2 * LAYERS, 0, 0].set(params["b_rb"][0, 0])
    b_all = b_all.at[2 * LAYERS, 1, 0].set(params["b_rg"][0, 0])

    return dict(
        h_init=h_init,                                  # f32 (residual path)
        w_emb=w_emb.astype(jnp.bfloat16),               # MXU operands in bf16
        w_all=w_all.astype(jnp.bfloat16),
        b_all=b_all,                                    # f32 biases
    )


# ---------------- Wrapper ------------------------------------------------------
@jax.jit
def pisid_forward(x_node, x_state, prep):
    bsz, in_len, n_nodes, _ = x_node.shape
    m = bsz * n_nodes

    # [B, L, N, D] -> [B, N, L*D] (transpose(1,2).view) -> channel-major, pad lanes.
    inp = x_node[..., :IN_DIM]
    x_ts = jnp.transpose(inp, (0, 2, 1, 3)).reshape(m, in_len * IN_DIM)
    x_ts_t = jnp.pad(x_ts.T.astype(jnp.bfloat16), ((0, 0), (0, M_PAD - m)))

    # SIR rows packed into one operand: rows [0,L) = infected series,
    # row L = population N, row L+1 = S proxy at t=-2.  Padded lanes get N=1
    # (avoids 1/0 -> inf/NaN in dead lanes), everything else 0.
    i_ser_t = jnp.transpose(x_state[:, :, :, 1], (1, 0, 2)).reshape(in_len, m)
    n_row = x_state[:, -1, :, 2].reshape(1, m)
    s0_row = x_state[:, -2, :, 0].reshape(1, m)
    sir = jnp.concatenate([i_ser_t, n_row, s0_row], axis=0)           # [L+2, m]
    pad_cols = jnp.zeros((in_len + 2, M_PAD - m), jnp.float32)
    pad_cols = pad_cols.at[in_len, :].set(1.0)                        # constant-folded
    sir = jnp.concatenate([sir, pad_cols], axis=1)                    # [L+2, M_PAD]

    vmem = pl.BlockSpec(memory_space=pltpu.MemorySpace.VMEM)
    # TODO(synk): once B*N grows past a few hundred, switch to a "parallel" grid
    # over 256-lane blocks of M (fills both v7x TensorCores, bounds VMEM).
    out = pl.pallas_call(
        pisid_kernel,
        out_shape=jax.ShapeDtypeStruct((OUT_LEN, M_PAD), jnp.float32),
        in_specs=[vmem] * 6,
        out_specs=vmem,
    )(x_ts_t, sir, prep["h_init"], prep["w_emb"], prep["w_all"], prep["b_all"])

    forecast = jnp.transpose(out[:, :m].reshape(OUT_LEN, bsz, n_nodes), (1, 0, 2))
    return forecast[..., None]                                        # [B, OUT_LEN, N, 1]


# ---------------- Pure-JAX reference (mirrors the PyTorch forward, f32) --------
def pisid_reference(x_node, x_state, params):
    bsz, in_len, n_nodes, _ = x_node.shape
    inp = x_node[..., :IN_DIM]
    x_ts = jnp.transpose(inp, (0, 2, 1, 3)).reshape(bsz, n_nodes, -1)
    ts_emb = x_ts @ params["w_emb"].T + params["b_emb"][:, 0]
    node_ft = jnp.broadcast_to(params["node_emb"][None], (bsz, n_nodes, NODE_DIM))
    h = jnp.concatenate([ts_emb, node_ft], axis=-1)
    for l in range(LAYERS):
        z = jnp.maximum(h @ params["w1"][l].T + params["b1"][l][:, 0], 0.0)
        z = z @ params["w2"][l].T + params["b2"][l][:, 0]
        h = h + z
    pb = _sigmoid(h @ params["w_rb"].T + params["b_rb"][:, 0])        # [B,N,1]
    pg = _sigmoid(h @ params["w_rg"].T + params["b_rg"][:, 0])        # [B,N,1]
    g4 = pg[:, None]                                                  # [B,1,N,1]
    Nv = x_state[:, -1, :, 2:3]
    i_hist = x_state[:, :, :, 1:2] / g4
    iin_hist = jnp.maximum(i_hist[:, 1:] - i_hist[:, :-1] + x_state[:, :-1, :, 1:2], 0.0)
    ages = jnp.arange(in_len - 1, 0, -1, dtype=jnp.float32)[None, :, None, None]
    i_tm1 = jnp.sum(jnp.exp(-g4 * ages) * iin_hist, axis=1)
    r_tm1 = Nv - x_state[:, -2, :, 0:1]
    s_tm1 = Nv - i_tm1 - r_tm1
    iin = pb * s_tm1 * i_tm1 / Nv
    iin_hist = jnp.concatenate([iin_hist, iin[:, None]], axis=1)
    s_t = s_tm1 - iin
    ages = jnp.arange(in_len, 0, -1, dtype=jnp.float32)[None, :, None, None]
    i_t = jnp.sum(jnp.exp(-g4 * ages) * iin_hist, axis=1)
    outs = []
    for i in range(OUT_LEN):
        iin = pb * s_t * i_t / Nv
        iin_hist = jnp.concatenate([iin_hist, iin[:, None]], axis=1)
        s_t = s_t - iin
        rin = pg * i_t
        ages = jnp.arange(in_len + i + 1, 0, -1, dtype=jnp.float32)[None, :, None, None]
        i_t = jnp.sum(jnp.exp(-g4 * ages) * iin_hist, axis=1)
        outs.append(rin)
    return jnp.stack(outs, axis=1)        # [B, OUT_LEN, N, 1]


if __name__ == "__main__":
    key = jax.random.PRNGKey(0)
    k_params, k1, k2, k3, k4 = jax.random.split(key, 5)
    params = init_params(k_params)
    prep = prepare_params(params, B)      # one-time, outside the per-call jit

    # x_node: [B, in_len, N, 2] (only channel 0 used since in_dim=1)
    x_node = jax.random.normal(k1, (B, IN_LEN, NUM_NODES, 2), dtype=jnp.float32)
    # x_state: [B, in_len, N, 3]  channels: [0]=S proxy, [1]=infected, [2]=population
    ch0 = jax.random.uniform(k2, (B, IN_LEN, NUM_NODES, 1), minval=80.0, maxval=95.0)
    ch1 = jax.random.uniform(k3, (B, IN_LEN, NUM_NODES, 1), minval=1.0, maxval=5.0)
    ch2 = jax.random.uniform(k4, (B, IN_LEN, NUM_NODES, 1), minval=90.0, maxval=110.0)
    x_state = jnp.concatenate([ch0, ch1, ch2], axis=-1).astype(jnp.float32)

    out = jax.block_until_ready(pisid_forward(x_node, x_state, prep))
    assert out.shape == (B, OUT_LEN, NUM_NODES, 1), out.shape

    ref = jax.block_until_ready(pisid_reference(x_node, x_state, params))
    # Slightly relaxed rtol accounts for bf16 MXU operands feeding the
    # exponentially-sensitive SIR recurrence (f32 reference).
    np.testing.assert_allclose(np.asarray(out), np.asarray(ref), rtol=3e-2, atol=2e-3)
    print("KERNEL_OK")
</pallas_src>

<mosaic_0001>
module attributes {stable_mosaic.version = 11 : i64} {
  func.func @pisid_kernel(%arg0: memref<8x128xbf16, #tpu.memory_space<vmem>>, %arg1: memref<10x128xf32, #tpu.memory_space<vmem>>, %arg2: memref<64x128xf32, #tpu.memory_space<vmem>>, %arg3: memref<64x8xbf16, #tpu.memory_space<vmem>>, %arg4: memref<7x64x64xbf16, #tpu.memory_space<vmem>>, %arg5: memref<7x64x1xf32, #tpu.memory_space<vmem>>, %arg6: memref<8x128xf32, #tpu.memory_space<vmem>>) attributes {dimension_semantics = [], scalar_prefetch = 0 : i64, scratch_operands = 0 : i64, tpu.core_type = #tpu.core_type<tc>} {
    %c0 = arith.constant 0 : index
    %c0_0 = arith.constant 0 : index
    %0 = vector.load %arg2[%c0, %c0_0] : memref<64x128xf32, #tpu.memory_space<vmem>>, vector<64x128xf32>
    %c0_1 = arith.constant 0 : index
    %c0_2 = arith.constant 0 : index
    %1 = vector.load %arg3[%c0_1, %c0_2] : memref<64x8xbf16, #tpu.memory_space<vmem>>, vector<64x8xbf16>
    %c0_3 = arith.constant 0 : index
    %c0_4 = arith.constant 0 : index
    %2 = vector.load %arg0[%c0_3, %c0_4] : memref<8x128xbf16, #tpu.memory_space<vmem>>, vector<8x128xbf16>
    %cst = arith.constant dense<0.000000e+00> : vector<64x128xf32>
    %3 = tpu.matmul %1, %2, %cst {dimension_numbers = #tpu.dot_dimension_numbers<[1], [0], [0], [1], [0, 0, 1, 1], [], []>} : vector<64x8xbf16>, vector<8x128xbf16>, vector<64x128xf32> -> vector<64x128xf32>
    %4 = arith.addf %0, %3 : vector<64x128xf32>
    %c0_5 = arith.constant 0 : index
    %c0_6 = arith.constant 0 : index
    %c0_7 = arith.constant 0 : index
    %5 = vector.load %arg4[%c0_5, %c0_6, %c0_7] : memref<7x64x64xbf16, #tpu.memory_space<vmem>>, vector<1x64x64xbf16>
    %6 = vector.shape_cast %5 : vector<1x64x64xbf16> to vector<64x64xbf16>
    %7 = arith.truncf %4 : vector<64x128xf32> to vector<64x128xbf16>
    %cst_8 = arith.constant dense<0.000000e+00> : vector<64x128xf32>
    %8 = tpu.matmul %6, %7, %cst_8 {dimension_numbers = #tpu.dot_dimension_numbers<[1], [0], [0], [1], [0, 0, 1, 1], [], []>} : vector<64x64xbf16>, vector<64x128xbf16>, vector<64x128xf32> -> vector<64x128xf32>
    %c0_9 = arith.constant 0 : index
    %c0_10 = arith.constant 0 : index
    %c0_11 = arith.constant 0 : index
    %9 = vector.load %arg5[%c0_9, %c0_10, %c0_11] : memref<7x64x1xf32, #tpu.memory_space<vmem>>, vector<1x64x1xf32>
    %10 = vector.shape_cast %9 : vector<1x64x1xf32> to vector<64x1xf32>
    %11 = vector.broadcast %10 : vector<64x1xf32> to vector<64x128xf32>
    %12 = arith.addf %8, %11 : vector<64x128xf32>
    %cst_12 = arith.constant 0.000000e+00 : f32
    %13 = vector.broadcast %cst_12 : f32 to vector<64x128xf32>
    %14 = arith.maximumf %12, %13 : vector<64x128xf32>
    %c1 = arith.constant 1 : index
    %c0_13 = arith.constant 0 : index
    %c0_14 = arith.constant 0 : index
    %15 = vector.load %arg4[%c1, %c0_13, %c0_14] : memref<7x64x64xbf16, #tpu.memory_space<vmem>>, vector<1x64x64xbf16>
    %16 = vector.shape_cast %15 : vector<1x64x64xbf16> to vector<64x64xbf16>
    %17 = arith.truncf %14 : vector<64x128xf32> to vector<64x128xbf16>
    %cst_15 = arith.constant dense<0.000000e+00> : vector<64x128xf32>
    %18 = tpu.matmul %16, %17, %cst_15 {dimension_numbers = #tpu.dot_dimension_numbers<[1], [0], [0], [1], [0, 0, 1, 1], [], []>} : vector<64x64xbf16>, vector<64x128xbf16>, vector<64x128xf32> -> vector<64x128xf32>
    %c1_16 = arith.constant 1 : index
    %c0_17 = arith.constant 0 : index
    %c0_18 = arith.constant 0 : index
    %19 = vector.load %arg5[%c1_16, %c0_17, %c0_18] : memref<7x64x1xf32, #tpu.memory_space<vmem>>, vector<1x64x1xf32>
    %20 = vector.shape_cast %19 : vector<1x64x1xf32> to vector<64x1xf32>
    %21 = vector.broadcast %20 : vector<64x1xf32> to vector<64x128xf32>
    %22 = arith.addf %18, %21 : vector<64x128xf32>
    %23 = arith.addf %4, %22 : vector<64x128xf32>
    %c2 = arith.constant 2 : index
    %c0_19 = arith.constant 0 : index
    %c0_20 = arith.constant 0 : index
    %24 = vector.load %arg4[%c2, %c0_19, %c0_20] : memref<7x64x64xbf16, #tpu.memory_space<vmem>>, vector<1x64x64xbf16>
    %25 = vector.shape_cast %24 : vector<1x64x64xbf16> to vector<64x64xbf16>
    %26 = arith.truncf %23 : vector<64x128xf32> to vector<64x128xbf16>
    %cst_21 = arith.constant dense<0.000000e+00> : vector<64x128xf32>
    %27 = tpu.matmul %25, %26, %cst_21 {dimension_numbers = #tpu.dot_dimension_numbers<[1], [0], [0], [1], [0, 0, 1, 1], [], []>} : vector<64x64xbf16>, vector<64x128xbf16>, vector<64x128xf32> -> vector<64x128xf32>
    %c2_22 = arith.constant 2 : index
    %c0_23 = arith.constant 0 : index
    %c0_24 = arith.constant 0 : index
    %28 = vector.load %arg5[%c2_22, %c0_23, %c0_24] : memref<7x64x1xf32, #tpu.memory_space<vmem>>, vector<1x64x1xf32>
    %29 = vector.shape_cast %28 : vector<1x64x1xf32> to vector<64x1xf32>
    %30 = vector.broadcast %29 : vector<64x1xf32> to vector<64x128xf32>
    %31 = arith.addf %27, %30 : vector<64x128xf32>
    %cst_25 = arith.constant 0.000000e+00 : f32
    %32 = vector.broadcast %cst_25 : f32 to vector<64x128xf32>
    %33 = arith.maximumf %31, %32 : vector<64x128xf32>
    %c3 = arith.constant 3 : index
    %c0_26 = arith.constant 0 : index
    %c0_27 = arith.constant 0 : index
    %34 = vector.load %arg4[%c3, %c0_26, %c0_27] : memref<7x64x64xbf16, #tpu.memory_space<vmem>>, vector<1x64x64xbf16>
    %35 = vector.shape_cast %34 : vector<1x64x64xbf16> to vector<64x64xbf16>
    %36 = arith.truncf %33 : vector<64x128xf32> to vector<64x128xbf16>
    %cst_28 = arith.constant dense<0.000000e+00> : vector<64x128xf32>
    %37 = tpu.matmul %35, %36, %cst_28 {dimension_numbers = #tpu.dot_dimension_numbers<[1], [0], [0], [1], [0, 0, 1, 1], [], []>} : vector<64x64xbf16>, vector<64x128xbf16>, vector<64x128xf32> -> vector<64x128xf32>
    %c3_29 = arith.constant 3 : index
    %c0_30 = arith.constant 0 : index
    %c0_31 = arith.constant 0 : index
    %38 = vector.load %arg5[%c3_29, %c0_30, %c0_31] : memref<7x64x1xf32, #tpu.memory_space<vmem>>, vector<1x64x1xf32>
    %39 = vector.shape_cast %38 : vector<1x64x1xf32> to vector<64x1xf32>
    %40 = vector.broadcast %39 : vector<64x1xf32> to vector<64x128xf32>
    %41 = arith.addf %37, %40 : vector<64x128xf32>
    %42 = arith.addf %23, %41 : vector<64x128xf32>
    %c4 = arith.constant 4 : index
    %c0_32 = arith.constant 0 : index
    %c0_33 = arith.constant 0 : index
    %43 = vector.load %arg4[%c4, %c0_32, %c0_33] : memref<7x64x64xbf16, #tpu.memory_space<vmem>>, vector<1x64x64xbf16>
    %44 = vector.shape_cast %43 : vector<1x64x64xbf16> to vector<64x64xbf16>
    %45 = arith.truncf %42 : vector<64x128xf32> to vector<64x128xbf16>
    %cst_34 = arith.constant dense<0.000000e+00> : vector<64x128xf32>
    %46 = tpu.matmul %44, %45, %cst_34 {dimension_numbers = #tpu.dot_dimension_numbers<[1], [0], [0], [1], [0, 0, 1, 1], [], []>} : vector<64x64xbf16>, vector<64x128xbf16>, vector<64x128xf32> -> vector<64x128xf32>
    %c4_35 = arith.constant 4 : index
    %c0_36 = arith.constant 0 : index
    %c0_37 = arith.constant 0 : index
    %47 = vector.load %arg5[%c4_35, %c0_36, %c0_37] : memref<7x64x1xf32, #tpu.memory_space<vmem>>, vector<1x64x1xf32>
    %48 = vector.shape_cast %47 : vector<1x64x1xf32> to vector<64x1xf32>
    %49 = vector.broadcast %48 : vector<64x1xf32> to vector<64x128xf32>
    %50 = arith.addf %46, %49 : vector<64x128xf32>
    %cst_38 = arith.constant 0.000000e+00 : f32
    %51 = vector.broadcast %cst_38 : f32 to vector<64x128xf32>
    %52 = arith.maximumf %50, %51 : vector<64x128xf32>
    %c5 = arith.constant 5 : index
    %c0_39 = arith.constant 0 : index
    %c0_40 = arith.constant 0 : index
    %53 = vector.load %arg4[%c5, %c0_39, %c0_40] : memref<7x64x64xbf16, #tpu.memory_space<vmem>>, vector<1x64x64xbf16>
    %54 = vector.shape_cast %53 : vector<1x64x64xbf16> to vector<64x64xbf16>
    %55 = arith.truncf %52 : vector<64x128xf32> to vector<64x128xbf16>
    %cst_41 = arith.constant dense<0.000000e+00> : vector<64x128xf32>
    %56 = tpu.matmul %54, %55, %cst_41 {dimension_numbers = #tpu.dot_dimension_numbers<[1], [0], [0], [1], [0, 0, 1, 1], [], []>} : vector<64x64xbf16>, vector<64x128xbf16>, vector<64x128xf32> -> vector<64x128xf32>
    %c5_42 = arith.constant 5 : index
    %c0_43 = arith.constant 0 : index
    %c0_44 = arith.constant 0 : index
    %57 = vector.load %arg5[%c5_42, %c0_43, %c0_44] : memref<7x64x1xf32, #tpu.memory_space<vmem>>, vector<1x64x1xf32>
    %58 = vector.shape_cast %57 : vector<1x64x1xf32> to vector<64x1xf32>
    %59 = vector.broadcast %58 : vector<64x1xf32> to vector<64x128xf32>
    %60 = arith.addf %56, %59 : vector<64x128xf32>
    %61 = arith.addf %42, %60 : vector<64x128xf32>
    %c6 = arith.constant 6 : index
    %c0_45 = arith.constant 0 : index
    %c0_46 = arith.constant 0 : index
    %62 = vector.load %arg4[%c6, %c0_45, %c0_46] : memref<7x64x64xbf16, #tpu.memory_space<vmem>>, vector<1x64x64xbf16>
    %63 = vector.shape_cast %62 : vector<1x64x64xbf16> to vector<64x64xbf16>
    %64 = arith.truncf %61 : vector<64x128xf32> to vector<64x128xbf16>
    %cst_47 = arith.constant dense<0.000000e+00> : vector<64x128xf32>
    %65 = tpu.matmul %63, %64, %cst_47 {dimension_numbers = #tpu.dot_dimension_numbers<[1], [0], [0], [1], [0, 0, 1, 1], [], []>} : vector<64x64xbf16>, vector<64x128xbf16>, vector<64x128xf32> -> vector<64x128xf32>
    %c6_48 = arith.constant 6 : index
    %c0_49 = arith.constant 0 : index
    %c0_50 = arith.constant 0 : index
    %66 = vector.load %arg5[%c6_48, %c0_49, %c0_50] : memref<7x64x1xf32, #tpu.memory_space<vmem>>, vector<1x64x1xf32>
    %67 = vector.shape_cast %66 : vector<1x64x1xf32> to vector<64x1xf32>
    %68 = vector.broadcast %67 : vector<64x1xf32> to vector<64x128xf32>
    %69 = arith.addf %65, %68 : vector<64x128xf32>
    %70 = vector.extract_strided_slice %69 {offsets = [0, 0], sizes = [2, 128], strides = [1, 1]} : vector<64x128xf32> to vector<2x128xf32>
    %cst_51 = arith.constant 0.000000e+00 : f32
    %71 = vector.broadcast %cst_51 : f32 to vector<2x128xf32>
    %72 = arith.subf %71, %70 : vector<2x128xf32>
    %73 = math.exp %72 : vector<2x128xf32>
    %cst_52 = arith.constant 1.000000e+00 : f32
    %74 = vector.broadcast %cst_52 : f32 to vector<2x128xf32>
    %75 = arith.addf %74, %73 : vector<2x128xf32>
    %76 = tpu.reciprocal %75 {approx = true} : vector<2x128xf32> -> vector<2x128xf32>
    %77 = vector.extract_strided_slice %76 {offsets = [0, 0], sizes = [1, 128], strides = [1, 1]} : vector<2x128xf32> to vector<1x128xf32>
    %78 = vector.extract_strided_slice %76 {offsets = [1, 0], sizes = [1, 128], strides = [1, 1]} : vector<2x128xf32> to vector<1x128xf32>
    %c0_53 = arith.constant 0 : index
    %c0_54 = arith.constant 0 : index
    %79 = vector.load %arg1[%c0_53, %c0_54] : memref<10x128xf32, #tpu.memory_space<vmem>>, vector<8x128xf32>
    %c8 = arith.constant 8 : index
    %c0_55 = arith.constant 0 : index
    %80 = vector.load %arg1[%c8, %c0_55] : memref<10x128xf32, #tpu.memory_space<vmem>>, vector<1x128xf32>
    %c9 = arith.constant 9 : index
    %c0_56 = arith.constant 0 : index
    %81 = vector.load %arg1[%c9, %c0_56] : memref<10x128xf32, #tpu.memory_space<vmem>>, vector<1x128xf32>
    %82 = tpu.reciprocal %80 {approx = true} : vector<1x128xf32> -> vector<1x128xf32>
    %cst_57 = arith.constant 1.000000e+00 : f32
    %83 = vector.broadcast %cst_57 : f32 to vector<1x128xf32>
    %84 = arith.divf %83, %78 : vector<1x128xf32>
    %cst_58 = arith.constant 0.000000e+00 : f32
    %85 = vector.broadcast %cst_58 : f32 to vector<1x128xf32>
    %86 = arith.subf %85, %78 : vector<1x128xf32>
    %87 = math.exp %86 : vector<1x128xf32>
    %88 = arith.mulf %77, %82 : vector<1x128xf32>
    %89 = vector.broadcast %84 : vector<1x128xf32> to vector<8x128xf32>
    %90 = arith.mulf %79, %89 : vector<8x128xf32>
    %91 = vector.extract_strided_slice %90 {offsets = [1, 0], sizes = [7, 128], strides = [1, 1]} : vector<8x128xf32> to vector<7x128xf32>
    %92 = vector.extract_strided_slice %90 {offsets = [0, 0], sizes = [7, 128], strides = [1, 1]} : vector<8x128xf32> to vector<7x128xf32>
    %93 = arith.subf %91, %92 : vector<7x128xf32>
    %94 = vector.extract_strided_slice %79 {offsets = [0, 0], sizes = [7, 128], strides = [1, 1]} : vector<8x128xf32> to vector<7x128xf32>
    %95 = arith.addf %93, %94 : vector<7x128xf32>
    %cst_59 = arith.constant 0.000000e+00 : f32
    %96 = vector.broadcast %cst_59 : f32 to vector<7x128xf32>
    %97 = arith.maximumf %95, %96 : vector<7x128xf32>
    %98 = tpu.iota {dimensions = array<i32: 0>} : vector<7x128xi32>
    %99 = arith.sitofp %98 : vector<7x128xi32> to vector<7x128xf32>
    %cst_60 = arith.constant 7.000000e+00 : f32
    %100 = vector.broadcast %cst_60 : f32 to vector<7x128xf32>
    %101 = arith.subf %100, %99 : vector<7x128xf32>
    %cst_61 = arith.constant 0.000000e+00 : f32
    %102 = vector.broadcast %cst_61 : f32 to vector<1x128xf32>
    %103 = arith.subf %102, %78 : vector<1x128xf32>
    %104 = vector.broadcast %103 : vector<1x128xf32> to vector<7x128xf32>
    %105 = arith.mulf %104, %101 : vector<7x128xf32>
    %106 = math.exp %105 : vector<7x128xf32>
    %107 = arith.mulf %106, %97 : vector<7x128xf32>
    %cst_62 = arith.constant dense<0.000000e+00> : vector<128xf32>
    %108 = vector.multi_reduction <add>, %107, %cst_62 [0] : vector<7x128xf32> to vector<128xf32>
    %109 = vector.shape_cast %108 : vector<128xf32> to vector<1x128xf32>
    %110 = arith.subf %81, %109 : vector<1x128xf32>
    %111 = arith.mulf %88, %110 : vector<1x128xf32>
    %112 = arith.mulf %111, %109 : vector<1x128xf32>
    %113 = arith.subf %110, %112 : vector<1x128xf32>
    %114 = arith.addf %109, %112 : vector<1x128xf32>
    %115 = arith.mulf %87, %114 : vector<1x128xf32>
    %116 = arith.mulf %88, %113 : vector<1x128xf32>
    %117 = arith.mulf %116, %115 : vector<1x128xf32>
    %118 = arith.subf %113, %117 : vector<1x128xf32>
    %119 = arith.mulf %78, %115 : vector<1x128xf32>
    %c0_63 = arith.constant 0 : index
    %c0_64 = arith.constant 0 : index
    %120 = vector.load %arg6[%c0_63, %c0_64] : memref<8x128xf32, #tpu.memory_space<vmem>>, vector<1x128xf32>
    tpu.vector_store %arg6[%c0_63, %c0_64], %119 {strides = array<i32>} : memref<8x128xf32, #tpu.memory_space<vmem>>, vector<1x128xf32>,
    %121 = arith.addf %115, %117 : vector<1x128xf32>
    %122 = arith.mulf %87, %121 : vector<1x128xf32>
    %123 = arith.mulf %88, %118 : vector<1x128xf32>
    %124 = arith.mulf %123, %122 : vector<1x128xf32>
    %125 = arith.subf %118, %124 : vector<1x128xf32>
    %126 = arith.mulf %78, %122 : vector<1x128xf32>
    %c1_65 = arith.constant 1 : index
    %c0_66 = arith.constant 0 : index
    %127 = vector.load %arg6[%c1_65, %c0_66] : memref<8x128xf32, #tpu.memory_space<vmem>>, vector<1x128xf32>
    tpu.vector_store %arg6[%c1_65, %c0_66], %126 {strides = array<i32>} : memref<8x128xf32, #tpu.memory_space<vmem>>, vector<1x128xf32>,
    %128 = arith.addf %122, %124 : vector<1x128xf32>
    %129 = arith.mulf %87, %128 : vector<1x128xf32>
    %130 = arith.mulf %88, %125 : vector<1x128xf32>
    %131 = arith.mulf %130, %129 : vector<1x128xf32>
    %132 = arith.subf %125, %131 : vector<1x128xf32>
    %133 = arith.mulf %78, %129 : vector<1x128xf32>
    %c2_67 = arith.constant 2 : index
    %c0_68 = arith.constant 0 : index
    %134 = vector.load %arg6[%c2_67, %c0_68] : memref<8x128xf32, #tpu.memory_space<vmem>>, vector<1x128xf32>
    tpu.vector_store %arg6[%c2_67, %c0_68], %133 {strides = array<i32>} : memref<8x128xf32, #tpu.memory_space<vmem>>, vector<1x128xf32>,
    %135 = arith.addf %129, %131 : vector<1x128xf32>
    %136 = arith.mulf %87, %135 : vector<1x128xf32>
    %137 = arith.mulf %88, %132 : vector<1x128xf32>
    %138 = arith.mulf %137, %136 : vector<1x128xf32>
    %139 = arith.subf %132, %138 : vector<1x128xf32>
    %140 = arith.mulf %78, %136 : vector<1x128xf32>
    %c3_69 = arith.constant 3 : index
    %c0_70 = arith.constant 0 : index
    %141 = vector.load %arg6[%c3_69, %c0_70] : memref<8x128xf32, #tpu.memory_space<vmem>>, vector<1x128xf32>
    tpu.vector_store %arg6[%c3_69, %c0_70], %140 {strides = array<i32>} : memref<8x128xf32, #tpu.memory_space<vmem>>, vector<1x128xf32>,
    %142 = arith.addf %136, %138 : vector<1x128xf32>
    %143 = arith.mulf %87, %142 : vector<1x128xf32>
    %144 = arith.mulf %88, %139 : vector<1x128xf32>
    %145 = arith.mulf %144, %143 : vector<1x128xf32>
    %146 = arith.subf %139, %145 : vector<1x128xf32>
    %147 = arith.mulf %78, %143 : vector<1x128xf32>
    %c4_71 = arith.constant 4 : index
    %c0_72 = arith.constant 0 : index
    %148 = vector.load %arg6[%c4_71, %c0_72] : memref<8x128xf32, #tpu.memory_space<vmem>>, vector<1x128xf32>
    tpu.vector_store %arg6[%c4_71, %c0_72], %147 {strides = array<i32>} : memref<8x128xf32, #tpu.memory_space<vmem>>, vector<1x128xf32>,
    %149 = arith.addf %143, %145 : vector<1x128xf32>
    %150 = arith.mulf %87, %149 : vector<1x128xf32>
    %151 = arith.mulf %88, %146 : vector<1x128xf32>
    %152 = arith.mulf %151, %150 : vector<1x128xf32>
    %153 = arith.subf %146, %152 : vector<1x128xf32>
    %154 = arith.mulf %78, %150 : vector<1x128xf32>
    %c5_73 = arith.constant 5 : index
    %c0_74 = arith.constant 0 : index
    %155 = vector.load %arg6[%c5_73, %c0_74] : memref<8x128xf32, #tpu.memory_space<vmem>>, vector<1x128xf32>
    tpu.vector_store %arg6[%c5_73, %c0_74], %154 {strides = array<i32>} : memref<8x128xf32, #tpu.memory_space<vmem>>, vector<1x128xf32>,
    %156 = arith.addf %150, %152 : vector<1x128xf32>
    %157 = arith.mulf %87, %156 : vector<1x128xf32>
    %158 = arith.mulf %88, %153 : vector<1x128xf32>
    %159 = arith.mulf %158, %157 : vector<1x128xf32>
    %160 = arith.mulf %78, %157 : vector<1x128xf32>
    %c6_75 = arith.constant 6 : index
    %c0_76 = arith.constant 0 : index
    %161 = vector.load %arg6[%c6_75, %c0_76] : memref<8x128xf32, #tpu.memory_space<vmem>>, vector<1x128xf32>
    tpu.vector_store %arg6[%c6_75, %c0_76], %160 {strides = array<i32>} : memref<8x128xf32, #tpu.memory_space<vmem>>, vector<1x128xf32>,
    %162 = arith.addf %157, %159 : vector<1x128xf32>
    %163 = arith.mulf %87, %162 : vector<1x128xf32>
    %164 = arith.mulf %78, %163 : vector<1x128xf32>
    %c7 = arith.constant 7 : index
    %c0_77 = arith.constant 0 : index
    %165 = vector.load %arg6[%c7, %c0_77] : memref<8x128xf32, #tpu.memory_space<vmem>>, vector<1x128xf32>
    tpu.vector_store %arg6[%c7, %c0_77], %164 {strides = array<i32>} : memref<8x128xf32, #tpu.memory_space<vmem>>, vector<1x128xf32>,
    return
  }
}

</mosaic_0001>

<bundles_post_ra>
// kernel: squeeze.4
= control target key start
LH: loop header
LB: loop body
LE: loop exit
PB: predicated region body
PF: predicated region fallthrough
CT: control target
= control target key end

     0   :  { %vm7_vm0 = vcmask 130048   ;;  %vm13_vm1 = vcmask 261248   ;;  %s39_s0 = inlined_call_operand.vmem [shape: f32[2,16], index: 0, kind: input, shape index: {}]   ;;  %s40_s1 = inlined_call_operand.vmem [shape: f32[1,32], index: 1, kind: output, shape index: {}]  }
   0x1   :  { %v4_v0 = vld [vmem:[%s39_s0] sm:$0x3]  ;;  %s22_s0 = smov 16  }
   0x2   :  { %5 = vst [vmem:[#allocation1] sm:$0x3] %v4_v0 }
   0x9   :  { %v10_v1 = vld [vmem:[#allocation1 + $0x1] sm:$0x1]   ;;  %v6_v2 = vld [vmem:[#allocation1] sm:$0x1]  }
   0xa   :  { %11 = vrot.lane.b32.xlu0 %v10_v1, %s22_s0  ;;  %8 = vst.msk [vmem:[#allocation0] sm:$0x1] %vm7_vm0, %v6_v2  }
  0x7c   :  { %v12_v3 = vpop.permute.xlu0 %11  }
  0x7d   :  { %14 = vst.msk [vmem:[#allocation0] sm:$0x1] %vm13_vm1, %v12_v3  }
  0x84   :  { %v17_v4 = vld [vmem:[#allocation0] sm:$0x1] }
  0x85   :  { %20 = vst [vmem:[%s40_s1] sm:$0x1] %v17_v4 }

// kernel: pisid_forward.1
= control target key start
LH: loop header
LB: loop body
LE: loop exit
PB: predicated region body
PF: predicated region fallthrough
CT: control target
= control target key end

     0   :  { %vm74_vm0 = vcmask 1043456   ;;  %vm61_vm1 = vcmask 64512   ;;  %v1477_v7 = vmov 0   ;;  %vm195_vm2 = vcmask 523264   ;;  %s1983_s0 = inlined_call_operand.vmem [shape: bf16[8,128], index: 0, kind: input, shape index: {}]   ;;  %s1984_s3 = inlined_call_operand.vmem [shape: bf16[64,8], index: 3, kind: input, shape index: {}]   ;;  %s1985_s5 = inlined_call_operand.vmem [shape: f32[7,64,1], index: 5, kind: input, shape index: {}]   ;;  %s1986_s2 = inlined_call_operand.vmem [shape: f32[64,128], index: 2, kind: input, shape index: {}]   ;;  %s1987_s4 = inlined_call_operand.vmem [shape: bf16[7,64,64], index: 4, kind: input, shape index: {}]   ;;  %s1988_s1 = inlined_call_operand.vmem [shape: f32[10,128], index: 1, kind: input, shape index: {}]   ;;  %s1989_s6 = inlined_call_operand.vmem [shape: f32[8,128], index: 6, kind: output, shape index: {}]  }
   0x1   :  { %v40_v0 = vld [vmem:[%s1983_s0] sm:$0xf]  ;;  %v1430_v3 = vld [vmem:[%s1984_s3 + $0x8] sm:$0xff]  ;;  %v1431_v4 = vld [vmem:[%s1984_s3 + $0x10] sm:$0xff]  ;;  %1462 = vset.pattern.permute.xlu0 %v1477_v7  ;;  %1463 = vset.pattern.permute.xlu1 %v1477_v7  ;;  %vm1060_vm7 = vcmask 1046528  }
   0x2   :  { %v76_v1 = vsel %vm74_vm0, %v40_v0, 0  ;;  %v1429_v2 = vld [vmem:[%s1984_s3] sm:$0xff]  ;;  %v1432_v5 = vld [vmem:[%s1984_s3 + $0x18] sm:$0xff]  ;;  %v133_v6 = vld [vmem:[%s1985_s5 + $0x30] sm:$0xff]  ;;  %1464 = vset.pattern.permute.xlu2 %v1477_v7 }
   0x3   :  { %85 = vmatpush.bf16.msra.mxu0 %v76_v1  ;;  %167 = vperm.xlu0 %1462, %v133_v6   ;;  %v134_v8 = vld [vmem:[%s1985_s5 + $0x38] sm:$0xff]  ;;  %v131_v9 = vld [vmem:[%s1985_s5 + $0x20] sm:$0xff]  ;;  %v132_v11 = vld [vmem:[%s1985_s5 + $0x28] sm:$0xff] }
   0x4   :  { %v127_v10 = vld [vmem:[%s1985_s5] sm:$0xff]  ;;  %157 = vperm.xlu1 %1463, %v131_v9   ;;  %v1228_v12 = vld [vmem:[%s1985_s5 + $0x78] sm:$0xff]  ;;  %v128_v14 = vld [vmem:[%s1985_s5 + $0x8] sm:$0xff] }
   0x5   :  { %v1223_v15 = vld [vmem:[%s1985_s5 + $0x50] sm:$0xff]  ;;  %v1225_v17 = vld [vmem:[%s1985_s5 + $0x60] sm:$0xff]  ;;  %v1222_v19 = vld [vmem:[%s1985_s5 + $0x48] sm:$0xff] }
   0x6   :  { %1189 = vmatmul.msk.bf16.vlgmr.msra.gmra.mxu0 %vm61_vm1, %v1429_v2  ;;  %v129_v18 = vld [vmem:[%s1985_s5 + $0x10] sm:$0xff]  ;;  %v1224_v21 = vld [vmem:[%s1985_s5 + $0x58] sm:$0xff]  ;;  %v1261_v23 = vld [vmem:[%s1985_s5 + $0xa0] sm:$0xff] }
   0x7   :  { %147 = vperm.xlu2 %1464, %v129_v18   ;;  %v130_v22 = vld [vmem:[%s1985_s5 + $0x18] sm:$0xff]  ;;  %v1263_v25 = vld [vmem:[%s1985_s5 + $0xb0] sm:$0xff]  ;;  %v1262_v29 = vld [vmem:[%s1985_s5 + $0xa8] sm:$0xff] }
   0x8   :  { %v1227_v26 = vld [vmem:[%s1985_s5 + $0x70] sm:$0xff]  ;;  %v1260_v27 = vld [vmem:[%s1985_s5 + $0x98] sm:$0xff]  ;;  %v1226_v30 = vld [vmem:[%s1985_s5 + $0x68] sm:$0xff] }
   0x9   :  { %v1299_v31 = vld [vmem:[%s1985_s5 + $0xf0] sm:$0xff]  ;;  %v1257_v33 = vld [vmem:[%s1985_s5 + $0x80] sm:$0xff]  ;;  %v1298_v35 = vld [vmem:[%s1985_s5 + $0xe8] sm:$0xff] }
   0xa   :  { %v1221_v34 = vld [vmem:[%s1985_s5 + $0x40] sm:$0xff]  ;;  %v1300_v36 = vld [vmem:[%s1985_s5 + $0xf8] sm:$0xff]  ;;  %v30_v40 = vld [vmem:[%s1986_s2 + $0x30] sm:$0xff] }
   0xb   :  { %172 = vperm.xlu0 %1462, %v134_v8   ;;  %v1264_v38 = vld [vmem:[%s1985_s5 + $0xb8] sm:$0xff]  ;;  %v1293_v39 = vld [vmem:[%s1985_s5 + $0xc0] sm:$0xff]  ;;  %v1295_v42 = vld [vmem:[%s1985_s5 + $0xd0] sm:$0xff] }
   0xc   :  { %162 = vperm.xlu1 %1463, %v132_v11   ;;  %v31_v41 = vld [vmem:[%s1986_s2 + $0x38] sm:$0xff]  ;;  %v29_v43 = vld [vmem:[%s1986_s2 + $0x28] sm:$0xff]  ;;  %v28_v47 = vld [vmem:[%s1986_s2 + $0x20] sm:$0xff] }
   0xd   :  { %v27_v50 = vld [vmem:[%s1986_s2 + $0x18] sm:$0xff]  ;;  %v1259_v51 = vld [vmem:[%s1985_s5 + $0x90] sm:$0xff]  ;;  %v1294_v57 = vld [vmem:[%s1985_s5 + $0xc8] sm:$0xff] }
   0xe   :  { %v1336_v52 = vld [vmem:[%s1985_s5 + $0x138] sm:$0xff]  ;;  %v26_v54 = vld [vmem:[%s1986_s2 + $0x10] sm:$0xff]  ;;  %v25_v58 = vld [vmem:[%s1986_s2 + $0x8] sm:$0xff] }
   0xf   :  { %152 = vperm.xlu2 %1464, %v130_v22   ;;  %v24_v60 = vld [vmem:[%s1986_s2] sm:$0xff]  ;;  %v1258_v63 = vld [vmem:[%s1985_s5 + $0x88] sm:$0xff]  ;;  %v1331_v0 = vld [vmem:[%s1985_s5 + $0x110] sm:$0xff] }
  0x10   :  { %v1330_v6 = vld [vmem:[%s1985_s5 + $0x108] sm:$0xff]  ;;  %v1332_v7 = vld [vmem:[%s1985_s5 + $0x118] sm:$0xff]  ;;  %v1369_v9 = vld [vmem:[%s1985_s5 + $0x160] sm:$0xff] }
  0x11   :  { %v1296_v8 = vld [vmem:[%s1985_s5 + $0xd8] sm:$0xff]  ;;  %v1434_v11 = vld [vmem:[%s1987_s4 + $0x8] sm:$0xff]  ;;  %v1435_v18 = vld [vmem:[%s1987_s4 + $0x10] sm:$0xff] }
  0x12   :  { %v1367_v22 = vld [vmem:[%s1985_s5 + $0x150] sm:$0xff] }
  0x13   :  { %137 = vperm.xlu0 %1462, %v127_v10   ;;  %v1371_v10 = vld [vmem:[%s1985_s5 + $0x170] sm:$0xff] }
  0x14   :  { %142 = vperm.xlu1 %1463, %v128_v14   ;;  %v1370_v14 = vld [vmem:[%s1985_s5 + $0x168] sm:$0xff] }
  0x16   :  { %1190 = vmatmul.msk.bf16.gmra.mxu0 %vm61_vm1, %v1430_v3  ;;  %v1333_v3 = vld [vmem:[%s1985_s5 + $0x120] sm:$0xff] }
  0x17   :  { %299 = vperm.xlu2 %1464, %v1227_v26  }
  0x1b   :  { %304 = vperm.xlu0 %1462, %v1228_v12   ;;  %v1335_v12 = vld [vmem:[%s1985_s5 + $0x130] sm:$0xff] }
  0x1c   :  { %289 = vperm.xlu1 %1463, %v1225_v17   ;;  %v1365_v17 = vld [vmem:[%s1985_s5 + $0x140] sm:$0xff] }
  0x1f   :  { %294 = vperm.xlu2 %1464, %v1226_v30  }
  0x23   :  { %279 = vperm.xlu0 %1462, %v1223_v15   ;;  %v1334_v15 = vld [vmem:[%s1985_s5 + $0x128] sm:$0xff] }
  0x24   :  { %284 = vperm.xlu1 %1463, %v1224_v21   ;;  %v1436_v21 = vld [vmem:[%s1987_s4 + $0x18] sm:$0xff] }
  0x26   :  { %1191 = vmatmul.msk.bf16.gmra.mxu0 %vm61_vm1, %v1431_v4  ;;  %v1433_v4 = vld [vmem:[%s1987_s4] sm:$0xff] }
  0x27   :  { %269 = vperm.xlu2 %1464, %v1221_v34  }
  0x2b   :  { %274 = vperm.xlu0 %1462, %v1222_v19   ;;  %v1329_v19 = vld [vmem:[%s1985_s5 + $0x100] sm:$0xff] }
  0x2c   :  { %430 = vperm.xlu1 %1463, %v1263_v25  }
  0x2f   :  { %435 = vperm.xlu2 %1464, %v1264_v38  }
  0x33   :  { %420 = vperm.xlu0 %1462, %v1261_v23   ;;  %v1366_v23 = vld [vmem:[%s1985_s5 + $0x148] sm:$0xff] }
  0x34   :  { %425 = vperm.xlu1 %1463, %v1262_v29  }
  0x36   :  { %1192 = vmatmul.msk.bf16.gmra.mxu0 %vm61_vm1, %v1432_v5  ;;  %v1297_v5 = vld [vmem:[%s1985_s5 + $0xe0] sm:$0xff] }
  0x37   :  { %410 = vperm.xlu2 %1464, %v1259_v51  }
  0x3b   :  { %415 = vperm.xlu0 %1462, %v1260_v27  }
  0x3c   :  { %400 = vperm.xlu1 %1463, %v1257_v33  }
  0x3f   :  { %405 = vperm.xlu2 %1464, %v1258_v63  }
  0x43   :  { %561 = vperm.xlu0 %1462, %v1299_v31  }
  0x44   :  { %566 = vperm.xlu1 %1463, %v1300_v36  }
  0x47   :  { %551 = vperm.xlu2 %1464, %v1297_v5   ;;  %v1438_v5 = vld [vmem:[%s1987_s4 + $0x28] sm:$0xff] }
  0x4b   :  { %556 = vperm.xlu0 %1462, %v1298_v35  }
  0x4c   :  { %541 = vperm.xlu1 %1463, %v1295_v42  }
  0x4f   :  { %546 = vperm.xlu2 %1464, %v1296_v8  }
  0x53   :  { %531 = vperm.xlu0 %1462, %v1293_v39  }
  0x54   :  { %536 = vperm.xlu1 %1463, %v1294_v57  }
  0x57   :  { %692 = vperm.xlu2 %1464, %v1335_v12  }
  0x5b   :  { %697 = vperm.xlu0 %1462, %v1336_v52  }
  0x5c   :  { %682 = vperm.xlu1 %1463, %v1333_v3  }
  0x5f   :  { %687 = vperm.xlu2 %1464, %v1334_v15  }
  0x61   :  { %v148_v33 = vpop.permute.xlu2 %147 }
  0x63   :  { %672 = vperm.xlu0 %1462, %v1331_v0  }
  0x64   :  { %677 = vperm.xlu1 %1463, %v1332_v7   ;;  %v1440_v7 = vld [vmem:[%s1987_s4 + $0x38] sm:$0xff] }
  0x67   :  { %662 = vperm.xlu2 %1464, %v1329_v19  }
  0x6b   :  { %667 = vperm.xlu0 %1462, %v1330_v6   ;;  %v1439_v6 = vld [vmem:[%s1987_s4 + $0x30] sm:$0xff] }
  0x6c   :  { %823 = vperm.xlu1 %1463, %v1371_v10  }
  0x73   :  { %813 = vperm.xlu0 %1462, %v1369_v9  }
  0x74   :  { %818 = vperm.xlu1 %1463, %v1370_v14  }
  0x75   :  { %v168_v31 = vpop.permute.xlu0 %167 }
  0x76   :  { %v158_v30 = vpop.permute.xlu1 %157 }
  0x7c   :  { %793 = vperm.xlu1 %1463, %v1365_v17  }
  0x7d   :  { %v173_v36 = vpop.permute.xlu0 %172 }
  0x7e   :  { %v163_v34 = vpop.permute.xlu1 %162 }
  0x83   :  { %v1546_v13 = vpop.f32.mrf.mxu0 }
  0x84   :  { %v1674_v1 = vadd.f32 %v1546_v13, %v24_v60  ;;  %v1368_v13 = vld [vmem:[%s1985_s5 + $0x158] sm:$0xff] }
  0x85   :  { %808 = vperm.xlu0 %1462, %v1368_v13  }
  0x86   :  { %v143_v52 = vpop.permute.xlu1 %142 }
  0x8b   :  { %v1554_v16 = vpop.f32.mrf.mxu0 }
  0x8c   :  { %v1663_v61 = vadd.f32 %v1554_v16, %v25_v58  ;;  %v1401_v16 = vld [vmem:[%s1985_s5 + $0x180] sm:$0xff]  ;;  %v138_v58 = vpop.permute.xlu0 %137 }
  0x8d   :  { %924 = vperm.xlu0 %1462, %v1401_v16  }
  0x8e   :  { %v123_v2 = vpack.c.bf16 %v1663_v61, %v1674_v1  ;;  %v290_v17 = vpop.permute.xlu1 %289 }
  0x93   :  { %v92_v20 = vpop.f32.mrf.mxu0 }
  0x94   :  { %v1657_v59 = vadd.f32 %v92_v20, %v26_v54  ;;  %v1372_v20 = vld [vmem:[%s1985_s5 + $0x178] sm:$0xff]  ;;  %v305_v14 = vpop.permute.xlu0 %304 }
  0x95   :  { %828 = vperm.xlu2 %1464, %v1372_v20  }
  0x9b   :  { %v94_v24 = vpop.f32.mrf.mxu0 }
  0x9c   :  { %v1647_v55 = vadd.f32 %v94_v24, %v27_v50 }
  0x9d   :  { %803 = vperm.xlu2 %1464, %v1367_v22  }
  0x9e   :  { %v124_v62 = vpack.c.bf16 %v1647_v55, %v1657_v59 }
  0xa3   :  { %v97_v28 = vpop.f32.mrf.mxu0 }
  0xa4   :  { %v1642_v53 = vadd.f32 %v97_v28, %v28_v47 }
  0xa5   :  { %798 = vperm.xlu2 %1464, %v1366_v23  }
  0xab   :  { %v99_v32 = vpop.f32.mrf.mxu0 }
  0xac   :  { %v1629_v48 = vadd.f32 %v99_v32, %v29_v43  ;;  %v153_v43 = vpop.permute.xlu2 %152 }
  0xae   :  { %v125_v56 = vpack.c.bf16 %v1629_v48, %v1642_v53 }
  0xb3   :  { %v102_v37 = vpop.f32.mrf.mxu0 }
  0xb4   :  { %v1622_v45 = vadd.f32 %v102_v37, %v30_v40  ;;  %v300_v15 = vpop.permute.xlu2 %299 }
  0xbb   :  { %v104_v44 = vpop.f32.mrf.mxu0 }
  0xbc   :  { %v1624_v46 = vadd.f32 %v104_v44, %v31_v41  ;;  %v295_v20 = vpop.permute.xlu2 %294 }
  0xbe   :  { %v126_v49 = vpack.c.bf16 %v1624_v46, %v1622_v45 }
  0xc0   :  { %212 = vmatpush.bf16.msra.mxu1 %v126_v49 }
  0xc4   :  { %213 = vmatpush.bf16.msra.mxu1 %v125_v56 }
  0xc8   :  { %214 = vmatpush.bf16.msra.mxu1 %v124_v62 }
  0xcc   :  { %215 = vmatpush.bf16.msra.mxu1 %v123_v2 }
  0xcf   :  { %1209 = vmatmul.msk.bf16.vlgmr.msra.gmra.mxu1 %vm195_vm2, %v1433_v4  ;;  %v1437_v4 = vld [vmem:[%s1987_s4 + $0x20] sm:$0xff] }
  0xdf   :  { %1210 = vmatmul.msk.bf16.gmra.mxu1 %vm195_vm2, %v1434_v11 }
  0xef   :  { %1211 = vmatmul.msk.bf16.gmra.mxu1 %vm195_vm2, %v1435_v18  ;;  %v280_v18 = vpop.permute.xlu0 %279 }
  0xff   :  { %1212 = vmatmul.msk.bf16.gmra.mxu1 %vm195_vm2, %v1436_v21 }
 0x14c   :  { %v217_v24 = vpop.f32.mrf.mxu1 }
 0x14d   :  { %v218_v60 = vadd.f32 %v217_v24, %v138_v58 }
 0x14f   :  { %v237_v2 = vmax.f32 %v218_v60, 0.0 }
 0x154   :  { %v219_v25 = vpop.f32.mrf.mxu1 }
 0x155   :  { %v220_v54 = vadd.f32 %v219_v25, %v143_v52 }
 0x157   :  { %v238_v63 = vmax.f32 %v220_v54, 0.0 }
 0x159   :  { %v254_v3 = vpack.c.bf16 %v238_v63, %v237_v2 }
 0x15c   :  { %v222_v26 = vpop.f32.mrf.mxu1 }
 0x15d   :  { %v223_v50 = vadd.f32 %v222_v26, %v148_v33  ;;  %v275_v33 = vpop.permute.xlu0 %274 }
 0x15f   :  { %v239_v62 = vmax.f32 %v223_v50, 0.0 }
 0x164   :  { %v224_v27 = vpop.f32.mrf.mxu1 }
 0x165   :  { %v225_v44 = vadd.f32 %v224_v27, %v153_v43  ;;  %v285_v27 = vpop.permute.xlu1 %284  ;;  %v421_v52 = vpop.permute.xlu0 %420 }
 0x167   :  { %v240_v56 = vmax.f32 %v225_v44, 0.0 }
 0x169   :  { %v255_v0 = vpack.c.bf16 %v240_v56, %v239_v62 }
 0x16c   :  { %v227_v28 = vpop.f32.mrf.mxu1 }
 0x16d   :  { %v228_v40 = vadd.f32 %v227_v28, %v158_v30  ;;  %v431_v50 = vpop.permute.xlu1 %430 }
 0x16f   :  { %v241_v51 = vmax.f32 %v228_v40, 0.0 }
 0x174   :  { %v229_v29 = vpop.f32.mrf.mxu1 }
 0x175   :  { %v230_v38 = vadd.f32 %v229_v29, %v163_v34 }
 0x177   :  { %v242_v47 = vmax.f32 %v230_v38, 0.0 }
 0x179   :  { %v256_v57 = vpack.c.bf16 %v242_v47, %v241_v51 }
 0x17c   :  { %v232_v32 = vpop.f32.mrf.mxu1 }
 0x17d   :  { %v233_v35 = vadd.f32 %v232_v32, %v168_v31 }
 0x17f   :  { %v243_v41 = vmax.f32 %v233_v35, 0.0  ;;  %v270_v35 = vpop.permute.xlu2 %269 }
 0x184   :  { %v234_v37 = vpop.f32.mrf.mxu1 }
 0x185   :  { %v235_v39 = vadd.f32 %v234_v37, %v173_v36 }
 0x187   :  { %v244_v42 = vmax.f32 %v235_v39, 0.0  ;;  %v1441_v39 = vld [vmem:[%s1987_s4 + $0x40] sm:$0xff] }
 0x189   :  { %v257_v49 = vpack.c.bf16 %v244_v42, %v243_v41 }
 0x18b   :  { %343 = vmatpush.bf16.msra.mxu2 %v257_v49  ;;  %v436_v49 = vpop.permute.xlu2 %435 }
 0x18f   :  { %344 = vmatpush.bf16.msra.mxu2 %v256_v57  ;;  %v426_v57 = vpop.permute.xlu1 %425 }
 0x193   :  { %345 = vmatpush.bf16.msra.mxu2 %v255_v0  ;;  %v411_v54 = vpop.permute.xlu2 %410 }
 0x197   :  { %346 = vmatpush.bf16.msra.mxu2 %v254_v3  ;;  %v416_v3 = vpop.permute.xlu0 %415 }
 0x19a   :  { %1245 = vmatmul.msk.bf16.vlgmr.msra.gmra.mxu2 %vm195_vm2, %v1437_v4 }
 0x1aa   :  { %1246 = vmatmul.msk.bf16.gmra.mxu2 %vm195_vm2, %v1438_v5 }
 0x1ba   :  { %1247 = vmatmul.msk.bf16.gmra.mxu2 %vm195_vm2, %v1439_v6 }
 0x1ca   :  { %1248 = vmatmul.msk.bf16.gmra.mxu2 %vm195_vm2, %v1440_v7 }
 0x21d   :  { %v348_v8 = vpop.f32.mrf.mxu2 }
 0x21e   :  { %v349_v36 = vadd.f32 %v348_v8, %v270_v35 }
 0x220   :  { %v1789_v38 = vadd.f32 %v349_v36, %v1674_v1  ;;  %v1444_v1 = vld [vmem:[%s1987_s4 + $0x58] sm:$0xff] }
 0x225   :  { %v350_v9 = vpop.f32.mrf.mxu2 }
 0x226   :  { %v351_v34 = vadd.f32 %v350_v9, %v275_v33  ;;  %v406_v9 = vpop.permute.xlu2 %405 }
 0x228   :  { %v1784_v37 = vadd.f32 %v351_v34, %v1663_v61  ;;  %v1443_v61 = vld [vmem:[%s1987_s4 + $0x50] sm:$0xff] }
 0x22d   :  { %v353_v10 = vpop.f32.mrf.mxu2 }
 0x22e   :  { %v354_v31 = vadd.f32 %v353_v10, %v280_v18  ;;  %v552_v36 = vpop.permute.xlu2 %551 }
 0x235   :  { %v355_v11 = vpop.f32.mrf.mxu2 }
 0x236   :  { %v356_v28 = vadd.f32 %v355_v11, %v285_v27 }
 0x23d   :  { %v358_v12 = vpop.f32.mrf.mxu2 }
 0x23e   :  { %v359_v24 = vadd.f32 %v358_v12, %v290_v17 }
 0x240   :  { %v1773_v32 = vadd.f32 %v359_v24, %v1642_v53 }
 0x245   :  { %v360_v13 = vpop.f32.mrf.mxu2 }
 0x246   :  { %v361_v22 = vadd.f32 %v360_v13, %v295_v20  ;;  %v401_v13 = vpop.permute.xlu1 %400  ;;  %v1445_v20 = vld [vmem:[%s1987_s4 + $0x60] sm:$0xff] }
 0x248   :  { %v1768_v29 = vadd.f32 %v361_v22, %v1629_v48  ;;  %v1781_v48 = vadd.f32 %v354_v31, %v1657_v59  ;;  %v1442_v59 = vld [vmem:[%s1987_s4 + $0x48] sm:$0xff]  ;;  %v1447_v22 = vld [vmem:[%s1987_s4 + $0x70] sm:$0xff] }
 0x24d   :  { %v363_v16 = vpop.f32.mrf.mxu2 }
 0x24e   :  { %v364_v19 = vadd.f32 %v363_v16, %v300_v15  ;;  %v567_v34 = vpop.permute.xlu1 %566 }
 0x250   :  { %v1762_v25 = vadd.f32 %v364_v19, %v1622_v45  ;;  %v1776_v45 = vadd.f32 %v356_v28, %v1647_v55  ;;  %v385_v55 = vpack.c.bf16 %v1784_v37, %v1789_v38 }
 0x252   :  { %v386_v53 = vpack.c.bf16 %v1776_v45, %v1781_v48 }
 0x255   :  { %v365_v21 = vpop.f32.mrf.mxu2 }
 0x256   :  { %v366_v23 = vadd.f32 %v365_v21, %v305_v14  ;;  %v1446_v21 = vld [vmem:[%s1987_s4 + $0x68] sm:$0xff] }
 0x258   :  { %v1765_v26 = vadd.f32 %v366_v23, %v1624_v46  ;;  %v387_v46 = vpack.c.bf16 %v1768_v29, %v1773_v32  ;;  %v1448_v23 = vld [vmem:[%s1987_s4 + $0x78] sm:$0xff] }
 0x25a   :  { %v388_v30 = vpack.c.bf16 %v1765_v26, %v1762_v25 }
 0x25c   :  { %474 = vmatpush.bf16.msra.mxu3 %v388_v30 }
 0x260   :  { %475 = vmatpush.bf16.msra.mxu3 %v387_v46  ;;  %v562_v46 = vpop.permute.xlu0 %561 }
 0x264   :  { %476 = vmatpush.bf16.msra.mxu3 %v386_v53  ;;  %v542_v53 = vpop.permute.xlu1 %541 }
 0x268   :  { %477 = vmatpush.bf16.msra.mxu3 %v385_v55 }
 0x26b   :  { %1281 = vmatmul.msk.bf16.vlgmr.msra.gmra.mxu3 %vm195_vm2, %v1441_v39  ;;  %v557_v39 = vpop.permute.xlu0 %556 }
 0x27b   :  { %1282 = vmatmul.msk.bf16.gmra.mxu3 %vm195_vm2, %v1442_v59 }
 0x28b   :  { %1283 = vmatmul.msk.bf16.gmra.mxu3 %vm195_vm2, %v1443_v61 }
 0x29b   :  { %1284 = vmatmul.msk.bf16.gmra.mxu3 %vm195_vm2, %v1444_v1 }
 0x2ee   :  { %v479_v40 = vpop.f32.mrf.mxu3 }
 0x2ef   :  { %v480_v14 = vadd.f32 %v479_v40, %v401_v13 }
 0x2f1   :  { %v499_v18 = vmax.f32 %v480_v14, 0.0 }
 0x2f6   :  { %v481_v41 = vpop.f32.mrf.mxu3 }
 0x2f7   :  { %v482_v10 = vadd.f32 %v481_v41, %v406_v9 }
 0x2f9   :  { %v500_v16 = vmax.f32 %v482_v10, 0.0 }
 0x2fb   :  { %v516_v19 = vpack.c.bf16 %v500_v16, %v499_v18 }
 0x2fe   :  { %v484_v42 = vpop.f32.mrf.mxu3 }
 0x2ff   :  { %v485_v7 = vadd.f32 %v484_v42, %v411_v54 }
 0x301   :  { %v501_v15 = vmax.f32 %v485_v7, 0.0 }
 0x306   :  { %v486_v43 = vpop.f32.mrf.mxu3 }
 0x307   :  { %v487_v4 = vadd.f32 %v486_v43, %v416_v3  ;;  %v547_v43 = vpop.permute.xlu2 %546 }
 0x309   :  { %v502_v11 = vmax.f32 %v487_v4, 0.0 }
 0x30b   :  { %v517_v17 = vpack.c.bf16 %v502_v11, %v501_v15 }
 0x30e   :  { %v489_v44 = vpop.f32.mrf.mxu3 }
 0x30f   :  { %v490_v63 = vadd.f32 %v489_v44, %v421_v52  ;;  %v537_v52 = vpop.permute.xlu1 %536  ;;  %v693_v7 = vpop.permute.xlu2 %692 }
 0x311   :  { %v503_v8 = vmax.f32 %v490_v63, 0.0 }
 0x316   :  { %v491_v47 = vpop.f32.mrf.mxu3 }
 0x317   :  { %v492_v60 = vadd.f32 %v491_v47, %v426_v57  ;;  %v683_v9 = vpop.permute.xlu1 %682 }
 0x319   :  { %v504_v5 = vmax.f32 %v492_v60, 0.0 }
 0x31b   :  { %v518_v12 = vpack.c.bf16 %v504_v5, %v503_v8 }
 0x31e   :  { %v494_v51 = vpop.f32.mrf.mxu3 }
 0x31f   :  { %v495_v56 = vadd.f32 %v494_v51, %v431_v50 }
 0x321   :  { %v505_v0 = vmax.f32 %v495_v56, 0.0  ;;  %v532_v56 = vpop.permute.xlu0 %531 }
 0x326   :  { %v496_v58 = vpop.f32.mrf.mxu3 }
 0x327   :  { %v497_v62 = vadd.f32 %v496_v58, %v436_v49 }
 0x329   :  { %v506_v2 = vmax.f32 %v497_v62, 0.0  ;;  %v1449_v62 = vld [vmem:[%s1987_s4 + $0x80] sm:$0xff] }
 0x32b   :  { %v519_v6 = vpack.c.bf16 %v506_v2, %v505_v0 }
 0x32d   :  { %605 = vmatpush.bf16.msrb.mxu0 %v519_v6  ;;  %v698_v6 = vpop.permute.xlu0 %697 }
 0x331   :  { %606 = vmatpush.bf16.msrb.mxu0 %v518_v12  ;;  %v688_v12 = vpop.permute.xlu2 %687 }
 0x335   :  { %607 = vmatpush.bf16.msrb.mxu0 %v517_v17  ;;  %v673_v10 = vpop.permute.xlu0 %672 }
 0x339   :  { %608 = vmatpush.bf16.msrb.mxu0 %v516_v19  ;;  %v678_v19 = vpop.permute.xlu1 %677 }
 0x33c   :  { %1317 = vmatmul.msk.bf16.vlgmr.msrb.gmra.mxu0 %vm195_vm2, %v1445_v20 }
 0x34c   :  { %1318 = vmatmul.msk.bf16.gmra.mxu0 %vm195_vm2, %v1446_v21 }
 0x35c   :  { %1319 = vmatmul.msk.bf16.gmra.mxu0 %vm195_vm2, %v1447_v22 }
 0x36c   :  { %1320 = vmatmul.msk.bf16.gmra.mxu0 %vm195_vm2, %v1448_v23 }
 0x3b9   :  { %v610_v24 = vpop.f32.mrf.mxu0 }
 0x3ba   :  { %v611_v57 = vadd.f32 %v610_v24, %v532_v56 }
 0x3bc   :  { %v1853_v60 = vadd.f32 %v611_v57, %v1789_v38  ;;  %v1452_v38 = vld [vmem:[%s1987_s4 + $0x98] sm:$0xff] }
 0x3c1   :  { %v612_v27 = vpop.f32.mrf.mxu0 }
 0x3c2   :  { %v613_v54 = vadd.f32 %v612_v27, %v537_v52  ;;  %v668_v27 = vpop.permute.xlu0 %667 }
 0x3c4   :  { %v1848_v58 = vadd.f32 %v613_v54, %v1784_v37  ;;  %v1451_v37 = vld [vmem:[%s1987_s4 + $0x90] sm:$0xff] }
 0x3c9   :  { %v615_v28 = vpop.f32.mrf.mxu0 }
 0x3ca   :  { %v616_v50 = vadd.f32 %v615_v28, %v542_v53  ;;  %v814_v57 = vpop.permute.xlu0 %813 }
 0x3d1   :  { %v617_v30 = vpop.f32.mrf.mxu0 }
 0x3d2   :  { %v618_v44 = vadd.f32 %v617_v30, %v547_v43 }
 0x3d9   :  { %v620_v31 = vpop.f32.mrf.mxu0 }
 0x3da   :  { %v621_v40 = vadd.f32 %v620_v31, %v552_v36 }
 0x3dc   :  { %v1837_v51 = vadd.f32 %v621_v40, %v1773_v32 }
 0x3e1   :  { %v622_v33 = vpop.f32.mrf.mxu0 }
 0x3e2   :  { %v623_v61 = vadd.f32 %v622_v33, %v557_v39  ;;  %v663_v33 = vpop.permute.xlu2 %662  ;;  %v1453_v39 = vld [vmem:[%s1987_s4 + $0xa0] sm:$0xff] }
 0x3e4   :  { %v1832_v47 = vadd.f32 %v623_v61, %v1768_v29  ;;  %v1845_v29 = vadd.f32 %v616_v50, %v1781_v48  ;;  %v1450_v48 = vld [vmem:[%s1987_s4 + $0x88] sm:$0xff]  ;;  %v1455_v61 = vld [vmem:[%s1987_s4 + $0xb0] sm:$0xff] }
 0x3e9   :  { %v625_v35 = vpop.f32.mrf.mxu0 }
 0x3ea   :  { %v626_v55 = vadd.f32 %v625_v35, %v562_v46  ;;  %v829_v54 = vpop.permute.xlu2 %828 }
 0x3ec   :  { %v1826_v41 = vadd.f32 %v626_v55, %v1762_v25  ;;  %v1840_v25 = vadd.f32 %v618_v44, %v1776_v45  ;;  %v647_v45 = vpack.c.bf16 %v1848_v58, %v1853_v60 }
 0x3ee   :  { %v648_v32 = vpack.c.bf16 %v1840_v25, %v1845_v29 }
 0x3f1   :  { %v627_v59 = vpop.f32.mrf.mxu0 }
 0x3f2   :  { %v628_v1 = vadd.f32 %v627_v59, %v567_v34  ;;  %v1454_v59 = vld [vmem:[%s1987_s4 + $0xa8] sm:$0xff] }
 0x3f4   :  { %v1829_v42 = vadd.f32 %v628_v1, %v1765_v26  ;;  %v649_v26 = vpack.c.bf16 %v1832_v47, %v1837_v51  ;;  %v1456_v1 = vld [vmem:[%s1987_s4 + $0xb8] sm:$0xff] }
 0x3f6   :  { %v650_v49 = vpack.c.bf16 %v1829_v42, %v1826_v41 }
 0x3f8   :  { %736 = vmatpush.bf16.msrb.mxu1 %v650_v49 }
 0x3fc   :  { %737 = vmatpush.bf16.msrb.mxu1 %v649_v26  ;;  %v824_v26 = vpop.permute.xlu1 %823 }
 0x400   :  { %738 = vmatpush.bf16.msrb.mxu1 %v648_v32  ;;  %v804_v32 = vpop.permute.xlu2 %803 }
 0x404   :  { %739 = vmatpush.bf16.msrb.mxu1 %v647_v45 }
 0x407   :  { %1353 = vmatmul.msk.bf16.vlgmr.msrb.gmra.mxu1 %vm195_vm2, %v1449_v62  ;;  %v819_v62 = vpop.permute.xlu1 %818 }
 0x417   :  { %1354 = vmatmul.msk.bf16.gmra.mxu1 %vm195_vm2, %v1450_v48 }
 0x427   :  { %1355 = vmatmul.msk.bf16.gmra.mxu1 %vm195_vm2, %v1451_v37 }
 0x437   :  { %1356 = vmatmul.msk.bf16.gmra.mxu1 %vm195_vm2, %v1452_v38 }
 0x484   :  { %v741_v63 = vpop.f32.mrf.mxu1 }
 0x485   :  { %v742_v34 = vadd.f32 %v741_v63, %v663_v33 }
 0x487   :  { %v761_v53 = vmax.f32 %v742_v34, 0.0 }
 0x48c   :  { %v743_v0 = vpop.f32.mrf.mxu1 }
 0x48d   :  { %v744_v28 = vadd.f32 %v743_v0, %v668_v27  ;;  %v1048_v27 = vlaneseq }
 0x48f   :  { %v762_v35 = vmax.f32 %v744_v28, 0.0  ;;  %v1049_v28 = vshrl.u32 %v1048_v27, 7 }
 0x491   :  { %v778_v55 = vpack.c.bf16 %v762_v35, %v761_v53  ;;  %v1050_v34 = vcvt.s32.f32 %v1049_v28 }
 0x494   :  { %v746_v2 = vpop.f32.mrf.mxu1 }
 0x495   :  { %v747_v23 = vadd.f32 %v746_v2, %v673_v10 }
 0x497   :  { %v763_v46 = vmax.f32 %v747_v23, 0.0 }
 0x49c   :  { %v748_v3 = vpop.f32.mrf.mxu1 }
 0x49d   :  { %v749_v20 = vadd.f32 %v748_v3, %v678_v19  ;;  %v809_v3 = vpop.permute.xlu0 %808 }
 0x49f   :  { %v764_v30 = vmax.f32 %v749_v20, 0.0 }
 0x4a1   :  { %v779_v36 = vpack.c.bf16 %v764_v30, %v763_v46 }
 0x4a4   :  { %v751_v4 = vpop.f32.mrf.mxu1 }
 0x4a5   :  { %v752_v16 = vadd.f32 %v751_v4, %v683_v9  ;;  %v799_v9 = vpop.permute.xlu2 %798 }
 0x4a7   :  { %v765_v24 = vmax.f32 %v752_v16, 0.0 }
 0x4ac   :  { %v753_v5 = vpop.f32.mrf.mxu1 }
 0x4ad   :  { %v754_v14 = vadd.f32 %v753_v5, %v688_v12 }
 0x4af   :  { %v766_v21 = vmax.f32 %v754_v14, 0.0 }
 0x4b1   :  { %v780_v31 = vpack.c.bf16 %v766_v21, %v765_v24 }
 0x4b4   :  { %v756_v8 = vpop.f32.mrf.mxu1 }
 0x4b5   :  { %v757_v11 = vadd.f32 %v756_v8, %v693_v7 }
 0x4b7   :  { %v767_v17 = vmax.f32 %v757_v11, 0.0 }
 0x4bc   :  { %v758_v13 = vpop.f32.mrf.mxu1 }
 0x4bd   :  { %v759_v15 = vadd.f32 %v758_v13, %v698_v6  ;;  %v794_v13 = vpop.permute.xlu1 %793 }
 0x4bf   :  { %v768_v18 = vmax.f32 %v759_v15, 0.0 }
 0x4c1   :  { %v781_v22 = vpack.c.bf16 %v768_v18, %v767_v17 }
 0x4c3   :  { %867 = vmatpush.bf16.msrb.mxu2 %v781_v22 }
 0x4c7   :  { %868 = vmatpush.bf16.msrb.mxu2 %v780_v31 }
 0x4cb   :  { %869 = vmatpush.bf16.msrb.mxu2 %v779_v36 }
 0x4cf   :  { %870 = vmatpush.bf16.msrb.mxu2 %v778_v55  ;;  %v1051_v55 = vsub.f32 7.0, %v1050_v34 }
 0x4d2   :  { %1389 = vmatmul.msk.bf16.vlgmr.msrb.gmra.mxu2 %vm195_vm2, %v1453_v39 }
 0x4e2   :  { %1390 = vmatmul.msk.bf16.gmra.mxu2 %vm195_vm2, %v1454_v59 }
 0x4f2   :  { %1391 = vmatmul.msk.bf16.gmra.mxu2 %vm195_vm2, %v1455_v61 }
 0x502   :  { %1392 = vmatmul.msk.bf16.gmra.mxu2 %vm195_vm2, %v1456_v1 }
 0x555   :  { %v872_v40 = vpop.f32.mrf.mxu2 }
 0x556   :  { %v873_v14 = vadd.f32 %v872_v40, %v794_v13  ;;  %v1014_v40 = vld [vmem:[%s1988_s1] sm:$0xff] }
 0x55d   :  { %v874_v43 = vpop.f32.mrf.mxu2 }
 0x55e   :  { %v875_v10 = vadd.f32 %v874_v43, %v799_v9 }
 0x565   :  { %v877_v44 = vpop.f32.mrf.mxu2 }
 0x566   :  { %v878_v7 = vadd.f32 %v877_v44, %v804_v32 }
 0x56d   :  { %v879_v49 = vpop.f32.mrf.mxu2 }
 0x56e   :  { %v880_v4 = vadd.f32 %v879_v49, %v809_v3 }
 0x570   :  { %v895_v11 = vadd.f32 %v880_v4, %v1840_v25  ;;  %v1458_v25 = vld [vmem:[%s1987_s4 + $0xc8] sm:$0xff] }
 0x575   :  { %v882_v50 = vpop.f32.mrf.mxu2 }
 0x576   :  { %v883_v63 = vadd.f32 %v882_v50, %v814_v57 }
 0x578   :  { %v896_v8 = vadd.f32 %v883_v63, %v1837_v51  ;;  %v1457_v51 = vld [vmem:[%s1987_s4 + $0xc0] sm:$0xff] }
 0x57d   :  { %v884_v52 = vpop.f32.mrf.mxu2 }
 0x57e   :  { %v885_v37 = vadd.f32 %v884_v52, %v819_v62 }
 0x580   :  { %v897_v5 = vadd.f32 %v885_v37, %v1832_v47  ;;  %v892_v47 = vadd.f32 %v873_v14, %v1853_v60  ;;  %v925_v60 = vpop.permute.xlu0 %924 }
 0x582   :  { %v911_v12 = vpack.c.bf16 %v897_v5, %v896_v8 }
 0x585   :  { %v887_v56 = vpop.f32.mrf.mxu2 }
 0x586   :  { %v888_v45 = vadd.f32 %v887_v56, %v824_v26  ;;  %v1044_v26 = vrot.slane %v1014_v40, 7 }
 0x588   :  { %v898_v0 = vadd.f32 %v888_v45, %v1826_v41  ;;  %v894_v41 = vadd.f32 %v878_v7, %v1845_v29  ;;  %v1459_v29 = vld [vmem:[%s1987_s4 + $0xd0] sm:$0xff] }
 0x58a   :  { %v910_v15 = vpack.c.bf16 %v895_v11, %v894_v41 }
 0x58d   :  { %v889_v48 = vpop.f32.mrf.mxu2 }
 0x58e   :  { %v890_v38 = vadd.f32 %v889_v48, %v829_v54 }
 0x590   :  { %v899_v2 = vadd.f32 %v890_v38, %v1829_v42  ;;  %v893_v42 = vadd.f32 %v875_v10, %v1848_v58  ;;  %v1460_v58 = vld [vmem:[%s1987_s4 + $0xd8] sm:$0xff]  ;;  %v1015_v38 = vld [vmem:[%s1988_s1 + $0x8] sm:$0x1] }
 0x592   :  { %v912_v6 = vpack.c.bf16 %v899_v2, %v898_v0  ;;  %v909_v16 = vpack.c.bf16 %v893_v42, %v892_v47 }
 0x594   :  { %991 = vmatpush.bf16.msrb.mxu3 %v912_v6  ;;  %v1016_v6 = vld [vmem:[%s1988_s1 + $0x9] sm:$0x1] }
 0x598   :  { %992 = vmatpush.bf16.msrb.mxu3 %v911_v12 }
 0x59c   :  { %993 = vmatpush.bf16.msrb.mxu3 %v910_v15 }
 0x5a0   :  { %994 = vmatpush.bf16.msrb.mxu3 %v909_v16 }
 0x5a3   :  { %1425 = vmatmul.msk.bf16.vlgmr.msrb.gmra.mxu3 %vm195_vm2, %v1457_v51 }
 0x5b3   :  { %1426 = vmatmul.msk.bf16.gmra.mxu3 %vm195_vm2, %v1458_v25 }
 0x5c3   :  { %1427 = vmatmul.msk.bf16.gmra.mxu3 %vm195_vm2, %v1459_v29 }
 0x5d3   :  { %1428 = vmatmul.msk.bf16.gmra.mxu3 %vm195_vm2, %v1460_v58 }
 0x626   :  { %v996_v17 = vpop.f32.mrf.mxu3 }
 0x627   :  { %v997_v18 = vadd.f32 %v996_v17, %v925_v60 }
 0x629   :  { %v1009_v19 = vsub.f32 0.0, %v997_v18 }
 0x62b   :  { %v1010_v20 = vmul.f32 1.442695, %v1009_v19 }
 0x62d   :  { %1465 = vpow2.f32 %v1010_v20 }
 0x62e   :  { %v998_v21 = vpop.f32.mrf.mxu3 }
 0x633   :  { %v1466_v22 = vpop.eup %1465 }
 0x634   :  { %v1012_v23 = vadd.f32 1.0, %v1466_v22 }
 0x636   :  { %1467 = vrcp.f32 %v1012_v23  ;;  %v1000_v13 = vpop.f32.mrf.mxu3 }
 0x63c   :  { %v1913_v24 = vpop.eup %1467 }
 0x63d   :  { %1469 = vrcp.f32 %v1913_v24  ;;  %v1033_v33 = vsub.f32 0.0, %v1913_v24  ;;  %v1029_v35 = vand.u32 2147483648, %v1913_v24  ;;  %v1027_v53 = vand.u32 2147483647, %v1913_v24 }
 0x63e   :  { %vm1023_vm4 = vweird.f32 %v1913_v24  ;;  %v1001_v29 = vpop.f32.mrf.mxu3 }
 0x63f   :  { %v1052_v39 = vperm.slane %v1033_v33, 1  ;;  %v1030_v61 = vor.u32 1.1754944e-38, %v1029_v35  ;;  %vm1028_vm6 = vcmp.eq.f32.partialorder %v1027_v53, 8.507059e+37  ;;  %v1034_v8 = vmul.f32 1.442695, %v1033_v33 }
 0x641   :  { %v1053_v44 = vmul.f32 %v1052_v39, %v1051_v55 }
 0x643   :  { %v1470_v30 = vpop.eup %1469  ;;  %v1054_v52 = vmul.f32 1.442695, %v1053_v44 }
 0x644   :  { %v1019_v31 = vmul.f32 %v1470_v30, %v1913_v24  ;;  %vm1024_vm3 = vweird.f32 %v1470_v30 }
 0x645   :  { %vm1025_vm5 = vmor %vm1023_vm4, %vm1024_vm3  ;;  %1471 = vpow2.f32 %v1054_v52 }
 0x646   :  { %v1020_v46 = vsub.f32 1.0, %v1019_v31  ;;  %1473 = vrcp.f32 %v1015_v38  ;;  %v1003_v20 = vpop.f32.mrf.mxu3 }
 0x647   :  { %1475 = vpow2.f32 %v1034_v8 }
 0x648   :  { %v1021_v36 = vmul.f32 %v1470_v30, %v1020_v46 }
 0x64a   :  { %v1022_v59 = vadd.f32 %v1470_v30, %v1021_v36 }
 0x64b   :  { %v1472_v62 = vpop.eup %1471 }
 0x64c   :  { %v1026_v1 = vsel %vm1025_vm5, %v1470_v30, %v1022_v59  ;;  %v1474_v5 = vpop.eup %1473 }
 0x64d   :  { %v1031_v43 = vsel %vm1028_vm6, %v1030_v61, %v1026_v1  ;;  %v1931_v9 = vmul.f32 %v1474_v5, %v1913_v24  ;;  %v1934_v15 = vpop.eup %1475 }
 0x64e   :  { %v1037_v49 = vperm.slane %v1031_v43, 1  ;;  %v1004_v33 = vpop.f32.mrf.mxu3 }
 0x650   :  { %v1038_v50 = vmul.f32 %v1037_v49, %v1014_v40 }
 0x652   :  { %v1040_v54 = vrot.slane %v1038_v50, 7 }
 0x654   :  { %v1042_v56 = vsub.f32 %v1038_v50, %v1040_v54 }
 0x656   :  { %v1046_v57 = vadd.f32 %v1044_v26, %v1042_v56  ;;  %v1006_v39 = vpop.f32.mrf.mxu3 }
 0x658   :  { %v1047_v32 = vmax.f32 %v1046_v57, 0.0 }
 0x65a   :  { %v1057_v45 = vrot.slane %v1047_v32, 1 }
 0x65c   :  { %v1059_v48 = vmul.f32 %v1472_v62, %v1057_v45 }
 0x65e   :  { %v1061_v37 = vsel %vm1060_vm7, %v1059_v48, 0.0  ;;  %v1007_v50 = vpop.f32.mrf.mxu3 }
 0x65f   :  { %v1062_v63 = vrot.slane %v1061_v37, 4 }
 0x661   :  { %v1063_v0 = vadd.f32 %v1062_v63, %v1061_v37 }
 0x663   :  { %v1064_v2 = vrot.slane %v1063_v0, 2 }
 0x665   :  { %v1065_v3 = vadd.f32 %v1064_v2, %v1063_v0 }
 0x667   :  { %v1066_v4 = vrot.slane %v1065_v3, 1 }
 0x669   :  { %v1067_v7 = vadd.f32 %v1066_v4, %v1065_v3 }
 0x66b   :  { %v1068_v10 = vsub.f32 %v1016_v6, %v1067_v7 }
 0x66d   :  { %v1069_v11 = vmul.f32 %v1068_v10, %v1931_v9 }
 0x66f   :  { %v1070_v12 = vmul.f32 %v1069_v11, %v1067_v7 }
 0x671   :  { %v1072_v14 = vadd.f32 %v1070_v12, %v1067_v7  ;;  %v1071_v41 = vsub.f32 %v1068_v10, %v1070_v12 }
 0x673   :  { %v1074_v42 = vrot.slane %v1072_v14, 7  ;;  %v1077_v16 = vmul.f32 %v1071_v41, %v1931_v9 }
 0x675   :  { %v1076_v47 = vmul.f32 %v1934_v15, %v1074_v42 }
 0x677   :  { %v1079_v51 = vrot.slane %v1076_v47, 1  ;;  %v1083_v25 = vmul.f32 %v1913_v24, %v1076_v47 }
 0x679   :  { %v1081_v58 = vmul.f32 %v1079_v51, %v1077_v16  ;;  %1084 = vst [vmem:[%s1989_s6 - $0x1] sm:$0x2] %v1083_v25 }
 0x67b   :  { %v1086_v60 = vrot.slane %v1081_v58, 7  ;;  %v1082_v17 = vsub.f32 %v1071_v41, %v1081_v58 }
 0x67d   :  { %v1088_v18 = vadd.f32 %v1086_v60, %v1076_v47  ;;  %v1090_v21 = vmul.f32 %v1082_v17, %v1931_v9 }
 0x67f   :  { %v1089_v19 = vmul.f32 %v1934_v15, %v1088_v18 }
 0x681   :  { %v1092_v22 = vrot.slane %v1089_v19, 1  ;;  %v1096_v23 = vmul.f32 %v1913_v24, %v1089_v19 }
 0x683   :  { %v1094_v27 = vmul.f32 %v1092_v22, %v1090_v21  ;;  %1097 = vst [vmem:[%s1989_s6] sm:$0x2] %v1096_v23 }
 0x685   :  { %v1099_v28 = vrot.slane %v1094_v27, 7  ;;  %v1095_v30 = vsub.f32 %v1082_v17, %v1094_v27 }
 0x687   :  { %v1101_v31 = vadd.f32 %v1099_v28, %v1089_v19  ;;  %v1103_v46 = vmul.f32 %v1095_v30, %v1931_v9 }
 0x689   :  { %v1102_v34 = vmul.f32 %v1934_v15, %v1101_v31 }
 0x68b   :  { %v1105_v35 = vrot.slane %v1102_v34, 1  ;;  %v1109_v36 = vmul.f32 %v1913_v24, %v1102_v34 }
 0x68d   :  { %v1107_v53 = vmul.f32 %v1105_v35, %v1103_v46  ;;  %1110 = vst [vmem:[%s1989_s6 + $0x1] sm:$0x2] %v1109_v36 }
 0x68f   :  { %v1112_v55 = vrot.slane %v1107_v53, 7  ;;  %v1108_v59 = vsub.f32 %v1095_v30, %v1107_v53 }
 0x691   :  { %v1114_v61 = vadd.f32 %v1112_v55, %v1102_v34  ;;  %v1116_v40 = vmul.f32 %v1108_v59, %v1931_v9 }
 0x693   :  { %v1115_v1 = vmul.f32 %v1934_v15, %v1114_v61 }
 0x695   :  { %v1118_v43 = vrot.slane %v1115_v1, 1  ;;  %v1122_v44 = vmul.f32 %v1913_v24, %v1115_v1 }
 0x697   :  { %v1120_v49 = vmul.f32 %v1118_v43, %v1116_v40  ;;  %1123 = vst [vmem:[%s1989_s6 + $0x2] sm:$0x2] %v1122_v44 }
 0x699   :  { %v1125_v52 = vrot.slane %v1120_v49, 7  ;;  %v1121_v54 = vsub.f32 %v1108_v59, %v1120_v49 }
 0x69b   :  { %v1127_v26 = vadd.f32 %v1125_v52, %v1115_v1  ;;  %v1129_v57 = vmul.f32 %v1121_v54, %v1931_v9 }
 0x69d   :  { %v1128_v56 = vmul.f32 %v1934_v15, %v1127_v26 }
 0x69f   :  { %v1131_v32 = vrot.slane %v1128_v56, 1  ;;  %v1135_v45 = vmul.f32 %v1913_v24, %v1128_v56 }
 0x6a1   :  { %v1133_v62 = vmul.f32 %v1131_v32, %v1129_v57  ;;  %1136 = vst [vmem:[%s1989_s6 + $0x3] sm:$0x2] %v1135_v45 }
 0x6a3   :  { %v1138_v48 = vrot.slane %v1133_v62, 7  ;;  %v1134_v37 = vsub.f32 %v1121_v54, %v1133_v62 }
 0x6a5   :  { %v1140_v38 = vadd.f32 %v1138_v48, %v1128_v56  ;;  %v1142_v0 = vmul.f32 %v1134_v37, %v1931_v9 }
 0x6a7   :  { %v1141_v63 = vmul.f32 %v1934_v15, %v1140_v38 }
 0x6a9   :  { %v1144_v2 = vrot.slane %v1141_v63, 1  ;;  %v1148_v3 = vmul.f32 %v1913_v24, %v1141_v63 }
 0x6ab   :  { %v1146_v4 = vmul.f32 %v1144_v2, %v1142_v0  ;;  %1149 = vst [vmem:[%s1989_s6 + $0x4] sm:$0x2] %v1148_v3 }
 0x6ad   :  { %v1151_v5 = vrot.slane %v1146_v4, 7  ;;  %v1147_v6 = vsub.f32 %v1134_v37, %v1146_v4 }
 0x6af   :  { %v1153_v7 = vadd.f32 %v1151_v5, %v1141_v63  ;;  %v1155_v10 = vmul.f32 %v1147_v6, %v1931_v9 }
 0x6b1   :  { %v1154_v8 = vmul.f32 %v1934_v15, %v1153_v7 }
 0x6b3   :  { %v1157_v11 = vrot.slane %v1154_v8, 1  ;;  %v1160_v12 = vmul.f32 %v1913_v24, %v1154_v8 }
 0x6b5   :  { %v1159_v13 = vmul.f32 %v1157_v11, %v1155_v10  ;;  %1161 = vst [vmem:[%s1989_s6 + $0x5] sm:$0x2] %v1160_v12 }
 0x6b7   :  { %v1163_v14 = vrot.slane %v1159_v13, 7 }
 0x6b9   :  { %v1165_v41 = vadd.f32 %v1163_v14, %v1154_v8 }
 0x6bb   :  { %v1166_v42 = vmul.f32 %v1934_v15, %v1165_v41 }
 0x6bd   :  { %v1167_v47 = vmul.f32 %v1913_v24, %v1166_v42 }
 0x6bf   :  { %1168 = vst [vmem:[%s1989_s6 + $0x6] sm:$0x2] %v1167_v47 }

</bundles_post_ra>
